<compile_context>
chip_gen: v7x
topology: tpu7x:2x2x1
jax: 0.10.0
libtpu: 0.0.40
codegen_flags: <defaults>
</compile_context>

<pallas_src>
import functools

import jax
import jax.numpy as jnp
from jax.experimental import pallas as pl
from jax.experimental.pallas import tpu as pltpu

_LANE = 128
_SUBLANE = 8


def _round_up(x: int, m: int) -> int:
    return ((x + m - 1) // m) * m


def _largest_tile(total: int, cap: int, align: int) -> int:
    """Largest t <= cap with t % align == 0 and total % t == 0.

    `total` is assumed to already be a multiple of `align`.
    """
    cap = max(align, min(cap, total))
    cap -= cap % align
    for t in range(cap, align - 1, -align):
        if total % t == 0:
            return t
    return align


# ---------------------------------------------------------------------------
# Kernels
# ---------------------------------------------------------------------------
def _dense_fused_kernel(x_ref, wt_ref, b_ref, o_ref):
    """One output tile in a single shot: o = x @ W^T + b (no K loop, no scratch)."""
    xv = x_ref[...]
    wv = wt_ref[...]
    if xv.dtype != wv.dtype:               # optional bf16-weight path (trace-time)
        xv = xv.astype(wv.dtype)
    acc = jnp.dot(xv, wv, preferred_element_type=jnp.float32)
    o_ref[...] = (acc + b_ref[...]).astype(o_ref.dtype)


def _dense_acc_kernel(x_ref, wt_ref, b_ref, o_ref, acc_ref):
    """Multi-K tile: the accumulator is initialized with the bias at k == 0."""
    k = pl.program_id(2)

    @pl.when(k == 0)
    def _():
        acc_ref[...] = jnp.broadcast_to(
            b_ref[...].astype(jnp.float32), acc_ref.shape)

    xv = x_ref[...]
    wv = wt_ref[...]
    if xv.dtype != wv.dtype:
        xv = xv.astype(wv.dtype)
    acc_ref[...] += jnp.dot(xv, wv, preferred_element_type=jnp.float32)

    @pl.when(k == pl.num_programs(2) - 1)
    def _():
        o_ref[...] = acc_ref[...].astype(o_ref.dtype)


# ---------------------------------------------------------------------------
# One-time parameter prep (NOT in the per-call hot path)
# ---------------------------------------------------------------------------
def prepare_dense_params(weight, bias, *, compute_dtype=jnp.float32,
                         tk_cap=1024, tn_cap=512,
                         weight_resident_bytes=4 << 20):
    """weight: [output_dim, input_dim] (nn.Linear layout), bias: [output_dim]."""
    weight = jnp.asarray(weight)
    bias = jnp.asarray(bias, jnp.float32)            # bias / accumulation stay f32
    N, K = weight.shape
    Np = _round_up(N, _LANE)

    wt = weight.T.astype(compute_dtype)              # [K, N], stored pre-transposed
    b_p = jnp.pad(bias, (0, Np - N)).reshape(1, Np)

    weight_resident = K * Np * wt.dtype.itemsize <= weight_resident_bytes
    if weight_resident:
        # W (and bias) stay resident in VMEM for the whole call; no K padding is
        # needed -- the x / W blocks use the full K extent, so x is never padded
        # along K in the hot path.
        wt_p = jnp.pad(wt, ((0, 0), (0, Np - N)))
        return dict(wt=wt_p, b=b_p, K=K, N=N, Kp=K, Np=Np,
                    tk=K, tn=Np, weight_resident=True)

    # Tiled fallback: align K to the lane width once; pick tiles that divide the
    # padded extents exactly (no padding beyond 128/8 alignment).
    Kp = _round_up(K, _LANE)
    tk = _largest_tile(Kp, tk_cap, _LANE)
    tn = _largest_tile(Np, tn_cap, _LANE)
    wt_p = jnp.pad(wt, ((0, Kp - K), (0, Np - N)))
    return dict(wt=wt_p, b=b_p, K=K, N=N, Kp=Kp, Np=Np,
                tk=tk, tn=tn, weight_resident=False)


# ---------------------------------------------------------------------------
# Forward
# ---------------------------------------------------------------------------
def dense_forward(x, params, *, tm_cap=512):
    """y = x @ W.T + b, with a trailing singleton axis appended ([..., None])."""
    wt_p, b_p = params["wt"], params["b"]
    K, N, Kp, Np = params["K"], params["N"], params["Kp"], params["Np"]
    tk, tn = params["tk"], params["tn"]

    lead = x.shape[:-1]
    assert x.shape[-1] == K, "last dim of x must equal input_dim"
    x2 = x.reshape(-1, K)
    M = x2.shape[0]
    out_dtype = x2.dtype

    # Pad the batch only to the sublane multiple (8), never to a tile multiple.
    Mp = _round_up(M, _SUBLANE)
    x_p = x2 if Mp == M else jnp.pad(x2, ((0, Mp - M), (0, 0)))
    tm = _largest_tile(Mp, tm_cap, _SUBLANE)
    # Give megacore / v7x dual-TC at least two M blocks when the batch is large
    # enough for the split to beat the ~0.35 us per-grid-step overhead.
    if Mp // tm == 1 and Mp >= 256 and (Mp // 2) % _SUBLANE == 0:
        tm = Mp // 2

    if params["weight_resident"]:
        # Grid over M only; W / bias block indices never change -> loaded once.
        cost = pl.CostEstimate(
            flops=2 * Mp * Np * K,
            transcendentals=0,
            bytes_accessed=(x_p.dtype.itemsize * Mp * K
                            + wt_p.dtype.itemsize * K * Np
                            + out_dtype.itemsize * Mp * Np
                            + 4 * Np),
        )
        out = pl.pallas_call(
            _dense_fused_kernel,
            out_shape=jax.ShapeDtypeStruct((Mp, Np), out_dtype),
            grid_spec=pltpu.PrefetchScalarGridSpec(
                num_scalar_prefetch=0,
                grid=(Mp // tm,),
                in_specs=[
                    pl.BlockSpec((tm, K), lambda i: (i, 0)),    # x: streams over M
                    pl.BlockSpec((K, Np), lambda i: (0, 0)),    # W^T: loaded once
                    pl.BlockSpec((1, Np), lambda i: (0, 0)),    # bias: loaded once
                ],
                out_specs=pl.BlockSpec((tm, Np), lambda i: (i, 0)),
            ),
            compiler_params=pltpu.CompilerParams(
                dimension_semantics=("parallel",)),
            cost_estimate=cost,
        )(x_p, wt_p, b_p)
    else:
        if Kp != K:
            x_p = jnp.pad(x_p, ((0, 0), (0, Kp - K)))
        n_k = Kp // tk
        cost = pl.CostEstimate(
            flops=2 * Mp * Np * Kp,
            transcendentals=0,
            bytes_accessed=(x_p.dtype.itemsize * Mp * Kp * (Np // tn)
                            + wt_p.dtype.itemsize * Kp * Np * (Mp // tm)
                            + out_dtype.itemsize * Mp * Np),
        )
        if n_k == 1:
            # Single-K fast path: no accumulator scratch, no pl.when branches.
            out = pl.pallas_call(
                _dense_fused_kernel,
                out_shape=jax.ShapeDtypeStruct((Mp, Np), out_dtype),
                grid_spec=pltpu.PrefetchScalarGridSpec(
                    num_scalar_prefetch=0,
                    grid=(Mp // tm, Np // tn),
                    in_specs=[
                        pl.BlockSpec((tm, tk), lambda i, j: (i, 0)),
                        pl.BlockSpec((tk, tn), lambda i, j: (0, j)),
                        pl.BlockSpec((1, tn), lambda i, j: (0, j)),
                    ],
                    out_specs=pl.BlockSpec((tm, tn), lambda i, j: (i, j)),
                ),
                compiler_params=pltpu.CompilerParams(
                    dimension_semantics=("parallel", "parallel"),
                    vmem_limit_bytes=48 << 20),
                cost_estimate=cost,
            )(x_p, wt_p, b_p)
        else:
            out = pl.pallas_call(
                _dense_acc_kernel,
                out_shape=jax.ShapeDtypeStruct((Mp, Np), out_dtype),
                grid_spec=pltpu.PrefetchScalarGridSpec(
                    num_scalar_prefetch=0,
                    grid=(Mp // tm, Np // tn, n_k),
                    in_specs=[
                        pl.BlockSpec((tm, tk), lambda i, j, k: (i, k)),
                        pl.BlockSpec((tk, tn), lambda i, j, k: (k, j)),
                        pl.BlockSpec((1, tn), lambda i, j, k: (0, j)),
                    ],
                    out_specs=pl.BlockSpec((tm, tn), lambda i, j, k: (i, j)),
                    scratch_shapes=[pltpu.VMEM((tm, tn), jnp.float32)],
                ),
                compiler_params=pltpu.CompilerParams(
                    dimension_semantics=("parallel", "parallel", "arbitrary"),
                    vmem_limit_bytes=48 << 20),
                cost_estimate=cost,
            )(x_p, wt_p, b_p)

    # Slice away padding, restore leading dims, append trailing singleton axis
    # (matches PyTorch `self.dense(x)[..., None]`).
    y = out[:M, :N].reshape(*lead, N)
    return y[..., None]


if __name__ == "__main__":
    # Small shapes consistent with the module: Dense(input_dim=32, output_dim=16)
    batch, input_dim, output_dim = 8, 32, 16

    key = jax.random.PRNGKey(0)
    kx, kw, kb = jax.random.split(key, 3)

    # Deterministic parameter init mimicking nn.Linear default (uniform +/- 1/sqrt(in))
    bound = 1.0 / jnp.sqrt(jnp.float32(input_dim))
    weight = jax.random.uniform(kw, (output_dim, input_dim), jnp.float32, -bound, bound)
    bias = jax.random.uniform(kb, (output_dim,), jnp.float32, -bound, bound)
    x = jax.random.normal(kx, (batch, input_dim), jnp.float32)

    # One-time parameter prep: transpose + lane padding happen HERE, not per call.
    params = prepare_dense_params(weight, bias)

    fwd = jax.jit(functools.partial(dense_forward, params=params))
    y = jax.block_until_ready(fwd(x))

    # Sanity check against plain-JAX reference.
    y_ref = (x @ weight.T + bias)[..., None]
    assert y.shape == (batch, output_dim, 1)
    assert jnp.allclose(y, y_ref, atol=1e-5, rtol=1e-5)

    print("KERNEL_OK")
</pallas_src>

<mosaic_0001>
module attributes {stable_mosaic.version = 11 : i64} {
  func.func @_dense_fused_kernel(%arg0: i32, %arg1: memref<8x32xf32, #tpu.memory_space<vmem>>, %arg2: memref<32x128xf32, #tpu.memory_space<vmem>>, %arg3: memref<1x128xf32, #tpu.memory_space<vmem>>, %arg4: memref<8x128xf32, #tpu.memory_space<vmem>>) attributes {dimension_semantics = [#tpu.dimension_semantics<parallel>], iteration_bounds = array<i64: 1>, scalar_prefetch = 0 : i64, scratch_operands = 0 : i64, tpu.core_type = #tpu.core_type<tc>, window_params = [{transform_indices = @transform_0, window_bounds = array<i64: 8, 32>}, {pipeline_mode = #tpu.pipeline_mode<synchronous>, transform_indices = @transform_1, window_bounds = array<i64: 32, 128>}, {pipeline_mode = #tpu.pipeline_mode<synchronous>, transform_indices = @transform_2, window_bounds = array<i64: 1, 128>}, {transform_indices = @transform_3, window_bounds = array<i64: 8, 128>}]} {
    %c0 = arith.constant 0 : index
    %c0_0 = arith.constant 0 : index
    %0 = vector.load %arg1[%c0, %c0_0] : memref<8x32xf32, #tpu.memory_space<vmem>>, vector<8x32xf32>
    %c0_1 = arith.constant 0 : index
    %c0_2 = arith.constant 0 : index
    %1 = vector.load %arg2[%c0_1, %c0_2] : memref<32x128xf32, #tpu.memory_space<vmem>>, vector<32x128xf32>
    %cst = arith.constant dense<0.000000e+00> : vector<8x128xf32>
    %2 = tpu.matmul %0, %1, %cst {dimension_numbers = #tpu.dot_dimension_numbers<[1], [0], [0], [1], [0, 0, 1, 1], [], []>} : vector<8x32xf32>, vector<32x128xf32>, vector<8x128xf32> -> vector<8x128xf32>
    %c0_3 = arith.constant 0 : index
    %c0_4 = arith.constant 0 : index
    %3 = vector.load %arg3[%c0_3, %c0_4] : memref<1x128xf32, #tpu.memory_space<vmem>>, vector<1x128xf32>
    %4 = vector.broadcast %3 : vector<1x128xf32> to vector<8x128xf32>
    %5 = arith.addf %2, %4 : vector<8x128xf32>
    %c0_5 = arith.constant 0 : index
    %c0_6 = arith.constant 0 : index
    %6 = vector.load %arg4[%c0_5, %c0_6] : memref<8x128xf32, #tpu.memory_space<vmem>>, vector<8x128xf32>
    tpu.vector_store %arg4[%c0_5, %c0_6], %5 {strides = array<i32>} : memref<8x128xf32, #tpu.memory_space<vmem>>, vector<8x128xf32>,
    return
  }
  func.func @transform_0(%arg0: i32) -> (i32, i32) {
    %c0_i32 = arith.constant 0 : i32
    %c0_i32_0 = arith.constant 0 : i32
    return %arg0, %c0_i32 : i32, i32
  }
  func.func @transform_1(%arg0: i32) -> (i32, i32) {
    %c0_i32 = arith.constant 0 : i32
    %c0_i32_0 = arith.constant 0 : i32
    %c0_i32_1 = arith.constant 0 : i32
    return %c0_i32, %c0_i32_0 : i32, i32
  }
  func.func @transform_2(%arg0: i32) -> (i32, i32) {
    %c0_i32 = arith.constant 0 : i32
    %c0_i32_0 = arith.constant 0 : i32
    %c0_i32_1 = arith.constant 0 : i32
    return %c0_i32, %c0_i32_0 : i32, i32
  }
  func.func @transform_3(%arg0: i32) -> (i32, i32) {
    %c0_i32 = arith.constant 0 : i32
    %c0_i32_0 = arith.constant 0 : i32
    return %arg0, %c0_i32 : i32, i32
  }
}

</mosaic_0001>

<bundles_post_ra>
// kernel: dense_forward.1
= control target key start
LH: loop header
LB: loop body
LE: loop exit
PB: predicated region body
PF: predicated region fallthrough
CT: control target
= control target key end

     0   :  { %8 = vsyncpa [#allocation3], 0  ;;  %s322_s0 = inlined_call_operand.hbm [shape: f32[8,32], index: 0, kind: input, shape index: {}]   ;;  %s323_s1 = inlined_call_operand.hbm [shape: f32[32,128], index: 1, kind: input, shape index: {}]   ;;  %s324_s2 = inlined_call_operand.vmem [shape: f32[1,128], index: 2, kind: input, shape index: {}]   ;;  %s325_s3 = inlined_call_operand.hbm [shape: f32[8,128], index: 3, kind: output, shape index: {}]  }
   0x1   :  { %9 = vsyncpa [#allocation6], 0 }
   0x2   :  { %10 = vsyncpa [#allocation4], 0  ;;  %s248_s12 = smov [#allocation2]   ;;  %s249_s14 = smov [#allocation5]  }
   0x3   :  { %s17_s13 = sshll.u32 %s248_s12, 4  ;;  %s26_s15 = sshll.u32 %s249_s14, 4  ;;  %s18_s13 = int_to_ptr.vmem [resolvable:$true] %s17_s13  ;;  %s276_s15 = int_to_ptr.vmem [resolvable:$true] %s26_s15 }
   0x4   :  { %s176_s18 = scalar_lea.hbm %s322_s0, 128 }
   0x5   :  { %p177_p0 = scmp.ne.s32.totalorder %s322_s0, %s176_s18  ;;  %p180_p1 = scmp.lt.u32.totalorder %s176_s18, %s322_s0 }
   0x7   :  { %p182_p2 = pnand %p180_p1, %p177_p0 }
   0x9   :  { %185 = shalt.err (!%p182_p2)
}
   0xa   :  { %s186_s23 = scalar_lea.vmem %s18_s13, 128  ;;  %p191_p4 = scmp.lt.s32.totalorder %s18_s13, %s18_s13 }
   0xb   :  { %p187_p3 = scmp.ne.s32.totalorder %s18_s13, %s186_s23  ;;  %p192_p5 = scmp.lt.s32.totalorder %s186_s23, %s186_s23 }
   0xd   :  { %p193_p6 = por %p192_p5, %p191_p4 }
   0xf   :  { %p194_p7 = pnand %p193_p6, %p187_p3 }
  0x11   :  { %197 = shalt.err (!%p194_p7)
}
  0x12   :  { %20 = dma.hbm_to_vmem [thread:$0]  %s322_s0, 128, %s18_s13, [#allocation3]  }
  0x13   :  { %s198_s28 = scalar_lea.hbm %s323_s1, 512 }
  0x14   :  { %p199_p8 = scmp.ne.s32.totalorder %s323_s1, %s198_s28  ;;  %p202_p9 = scmp.lt.u32.totalorder %s198_s28, %s323_s1 }
  0x16   :  { %p204_p10 = pnand %p202_p9, %p199_p8 }
  0x18   :  { %207 = shalt.err (!%p204_p10)
}
  0x19   :  { %s208_s6 = scalar_lea.vmem %s276_s15, 512  ;;  %p213_p12 = scmp.lt.s32.totalorder %s276_s15, %s276_s15 }
  0x1a   :  { %p209_p11 = scmp.ne.s32.totalorder %s276_s15, %s208_s6  ;;  %p214_p13 = scmp.lt.s32.totalorder %s208_s6, %s208_s6 }
  0x1c   :  { %p215_p0 = por %p214_p13, %p213_p12 }
  0x1e   :  { %p216_p1 = pnand %p215_p0, %p209_p11 }
  0x20   :  { %219 = shalt.err (!%p216_p1)
}
  0x21   :  { %s250_s0 = smov 128   ;;  %s251_s7 = smov 8  }
  0x22   :  { %32 = dma.hbm_to_vmem [thread:$0]  %s323_s1, 512, %s276_s15, [#allocation6], %s250_s0, %s250_s0, %s251_s7  }
  0x23   :  { %242 = dma.done.wait [#allocation3], 128  }
  0x24   :  { %243 = vsyncadd [#allocation3], 4294967168 }
  0x25   :  { %244 = dma.done.wait [#allocation6], 512  }
  0x26   :  { %245 = vsyncadd [#allocation6], 4294966784  ;;  %v252_v0 = vmov 0.0|0.0   ;;  %vm253_vm0 = vmmov 0   ;;  %v254_v1 = vmov 0.0   ;;  %v42_v2 = vld [vmem:[#allocation5] sm:$0xff] }
  0x27   :  { %162 = vmatprep.subr.bf16.mxu0 %v252_v0  ;;  %159 = vmatprep.mubr.msk.f32.mxu0 %vm253_vm0, %v254_v1  ;;  %v43_v3 = vld [vmem:[#allocation5 + $0x8] sm:$0xff]  ;;  %v44_v4 = vld [vmem:[#allocation5 + $0x10] sm:$0xff]  ;;  %v45_v6 = vld [vmem:[#allocation5 + $0x18] sm:$0xff]  ;;  %vm53_vm1 = vcmask 261120   ;;  %s255_s11 = smov [#allocation7]  }
  0x28   :  { %v163_v5 = vpack.c.bf16 %v43_v3, %v42_v2  ;;  %v166_v7 = vpack.c.bf16 %v45_v6, %v44_v4  ;;  %v41_v8 = vld [vmem:[#allocation2] sm:$0xff]  ;;  %s134_s12 = sshll.u32 %s255_s11, 4  ;;  %s135_s12 = int_to_ptr.vmem [resolvable:$true] %s134_s12 }
  0x29   :  { %v144_v9 = vld [vmem:[%s324_s2] ss:$0 sm:$0xff]  ;;  %s220_s13 = scalar_lea.vmem %s135_s12, 128  ;;  %p225_p3 = scmp.lt.s32.totalorder %s135_s12, %s135_s12 }
  0x2a   :  { %164 = vmatpush3.bf16.msra.mxu0 %v163_v5  ;;  %p221_p2 = scmp.ne.s32.totalorder %s135_s12, %s220_s13  ;;  %p226_p4 = scmp.lt.s32.totalorder %s220_s13, %s220_s13 }
  0x2b   :  { %165 = vmatprep.subr.bf16.mxu0 %v252_v0 }
  0x2c   :  { %p227_p5 = por %p226_p4, %p225_p3 }
  0x2e   :  { %167 = vmatpush3.bf16.msra.mxu0 %v166_v7  ;;  %p228_p6 = pnand %p227_p5, %p221_p2 }
  0x31   :  { %160 = vmatmul.mubr.msk.f32.vlgmr.msra.gmra.mrb[0].mxu0 %vm53_vm1, %v41_v8 }
 0x104   :  { %v123_v10 = vpop.f32.mrb[0].mxu0 }
 0x105   :  { %v124_v11 = vadd.f32 %v144_v9, %v123_v10  ;;  %v161_v12 = vpop.f32.mrb[1].mxu0 }
 0x107   :  { %127 = vst [vmem:[#allocation7] sm:$0xff] %v124_v11 }
 0x108   :  { %231 = shalt.err (!%p228_p6)
}
 0x109   :  { %s232_s16 = scalar_lea.hbm %s325_s3, 128 }
 0x10a   :  { %p233_p7 = scmp.ne.s32.totalorder %s325_s3, %s232_s16  ;;  %p236_p8 = scmp.lt.u32.totalorder %s232_s16, %s325_s3 }
 0x10c   :  { %p238_p9 = pnand %p236_p8, %p233_p7 }
 0x10e   :  { %241 = shalt.err (!%p238_p9)
}
 0x10f   :  { %137 = dma.vmem_to_hbm [thread:$0]  %s135_s12, 128, %s325_s3, [#allocation4]  }
 0x110   :  { %246 = dma.done.wait [#allocation4], 128  }
 0x111   :  { %247 = vsyncadd [#allocation4], 4294967168 }
 0x112   :  { %141 = vsyncpa [#allocation3], 1 }
 0x113   :  { %142 = vsyncpa [#allocation6], 1 }
 0x114   :  { %143 = vsyncpa [#allocation4], 1 }

</bundles_post_ra>
